<compile_context>
chip_gen: v7x
topology: tpu7x:2x2x1
jax: 0.10.0
libtpu: 0.0.40
codegen_flags: <defaults>
</compile_context>

<pallas_src>
import jax
import jax.numpy as jnp
import numpy as np
from jax.experimental import pallas as pl
from jax.experimental.pallas import tpu as pltpu


def _round_up(x, m):
    return (x + m - 1) // m * m


# ---------------------------------------------------------------------------
# Pallas kernel: tiled  out = A @ F   (bf16 inputs, f32 accumulation)
#   A = [A_gcn | A_assign]            (N1p, Kp)
#   F = [y @ Wgcn^T ; sup_x @ Wrel^T] (Kp, Cp)   Cp = Cout padded to 128 lanes
# grid = (row tiles, K tiles); K is the reduction axis (last, "arbitrary").
# ---------------------------------------------------------------------------
def _fused_spmm_kernel(a_ref, f_ref, out_ref, acc_ref):
    @pl.when(pl.program_id(1) == 0)
    def _():
        acc_ref[...] = jnp.zeros_like(acc_ref)

    acc_ref[...] += jnp.dot(a_ref[...], f_ref[...],
                            preferred_element_type=jnp.float32)

    @pl.when(pl.program_id(1) == pl.num_programs(1) - 1)
    def _():
        out_ref[...] = acc_ref[...].astype(out_ref.dtype)


def _fused_spmm(a, f, *, tm, tk):
    m, k = a.shape
    _, n = f.shape
    grid = (m // tm, k // tk)
    bytes_accessed = (m * k * a.dtype.itemsize          # A read once
                      + grid[0] * k * n * f.dtype.itemsize  # F re-read per row tile
                      + m * n * 4)                       # f32 output
    return pl.pallas_call(
        _fused_spmm_kernel,
        out_shape=jax.ShapeDtypeStruct((m, n), jnp.float32),
        grid_spec=pltpu.PrefetchScalarGridSpec(
            num_scalar_prefetch=0,
            grid=grid,
            in_specs=[pl.BlockSpec((tm, tk), lambda i, kk: (i, kk)),
                      pl.BlockSpec((tk, n), lambda i, kk: (kk, 0))],
            out_specs=pl.BlockSpec((tm, n), lambda i, kk: (i, 0)),
            scratch_shapes=[pltpu.VMEM((tm, n), jnp.float32)]),
        compiler_params=pltpu.CompilerParams(
            dimension_semantics=("parallel", "arbitrary"),
            vmem_limit_bytes=32 * 1024 * 1024),
        cost_estimate=pl.CostEstimate(
            flops=2 * m * k * n,
            transcendentals=0,
            bytes_accessed=bytes_accessed),
    )(a, f)


# ---------------------------------------------------------------------------
# JAX glue: torch_geometric gcn_norm(improved=True) on fixed-shape edge lists.
# add_remaining_self_loops: drop existing self-loops, append one self-loop per
# node whose weight is the original self-loop weight if the node had one,
# otherwise fill_value = 2.0 (improved).
# ---------------------------------------------------------------------------
def _gcn_norm_improved(edge_index, edge_weight, num_nodes):
    row, col = edge_index[0], edge_index[1]
    is_loop = row == col
    keep_w = jnp.where(is_loop, 0.0, edge_weight)   # "drop" existing self-loops

    n = num_nodes
    loop_w = jnp.full((n,), 2.0, dtype=edge_weight.dtype)
    # Nodes that already had a self-loop keep its weight (add_remaining_self_loops).
    loop_w = loop_w.at[jnp.where(is_loop, row, n)].set(edge_weight, mode="drop")

    loop = jnp.arange(n, dtype=row.dtype)
    row_f = jnp.concatenate([row, loop])
    col_f = jnp.concatenate([col, loop])
    w_f = jnp.concatenate([keep_w, loop_w])

    deg = jnp.zeros((n,), dtype=edge_weight.dtype).at[col_f].add(w_f)
    deg_inv_sqrt = jnp.where(deg > 0, jax.lax.rsqrt(jnp.maximum(deg, 1e-30)), 0.0)
    norm = deg_inv_sqrt[row_f] * w_f * deg_inv_sqrt[col_f]
    return row_f, col_f, norm


def trans_un_pool(sup_x, y, edge_index, edge_weight,
                  assign_index, assign_weight, w_rel, w_gcn):
    """Forward pass of TransUnPool.

    sup_x : (N2, Cin)  coarse-graph features
    y     : (N1, Cin)  fine-graph features
    edge_index   : (2, E)  int32, fine-graph edges (row=src, col=dst)
    assign_index : (2, Ea) int32, bipartite edges (row=src in [0,N2), col=dst in [0,N1))
    w_rel, w_gcn : (Cout, Cin)  torch Linear-style weights (no bias)

    Returns (x, edge_index, edge_weight) with x of shape (N1, Cout).
    """
    n1 = y.shape[0]
    n2 = sup_x.shape[0]
    cout = w_rel.shape[0]
    f32 = jnp.float32

    # ---- generation-aware tile / padding choices ------------------------
    k_raw = n1 + n2
    tm = min(512, _round_up(n1, 8))        # row tile (multiple of 8 sublanes)
    tk = min(512, _round_up(k_raw, 128))   # K tile  (multiple of 128 lanes)
    n1_pad = _round_up(n1, tm)
    k_pad = _round_up(k_raw, tk)
    cout_pad = _round_up(cout, 128)        # lane-dense output slab

    # ---- fused adjacency slab  A = [A_gcn | A_assign]  ------------------
    row_f, col_f, norm = _gcn_norm_improved(edge_index, edge_weight.astype(f32), n1)
    a = jnp.zeros((n1_pad, k_pad), f32)
    a = a.at[col_f, row_f].add(norm)                                     # GCN block
    a = a.at[assign_index[1], n1 + assign_index[0]].add(
        assign_weight.astype(f32))                                       # bipartite block

    # ---- fused pre-transformed feature slab  F = [y Wg^T ; sup_x Wr^T] --
    # Reassociation: the (bias-free) linear layers are applied BEFORE the SpMM,
    # so the expensive contraction is a single A @ F matmul.
    f_top = jnp.dot(y.astype(f32), w_gcn.T.astype(f32))                  # (N1, Cout)
    f_bot = jnp.dot(sup_x.astype(f32), w_rel.T.astype(f32))              # (N2, Cout)
    f = jnp.zeros((k_pad, cout_pad), f32)
    f = f.at[:n1, :cout].set(f_top)
    f = f.at[n1:n1 + n2, :cout].set(f_bot)

    # bf16 for the dominant HBM traffic / MXU inputs; accumulation stays f32.
    out_pad = _fused_spmm(a.astype(jnp.bfloat16), f.astype(jnp.bfloat16),
                          tm=tm, tk=tk)
    x = out_pad[:n1, :cout]
    return x, edge_index, edge_weight


# ---------------------------------------------------------------------------
# Pure-JAX f32 reference (edge-scatter form) for a sanity check.
# ---------------------------------------------------------------------------
def _reference(sup_x, y, edge_index, edge_weight,
               assign_index, assign_weight, w_rel, w_gcn):
    n1 = y.shape[0]
    agg_bi = jnp.zeros((n1, sup_x.shape[1]), jnp.float32).at[assign_index[1]].add(
        assign_weight[:, None] * sup_x[assign_index[0]])
    x_bi = agg_bi @ w_rel.T

    row_f, col_f, norm = _gcn_norm_improved(edge_index, edge_weight, n1)
    y_lin = y @ w_gcn.T
    x_gcn = jnp.zeros((n1, w_gcn.shape[0]), jnp.float32).at[col_f].add(
        norm[:, None] * y_lin[row_f])
    return x_bi + x_gcn


if __name__ == "__main__":
    key = jax.random.PRNGKey(0)
    k = jax.random.split(key, 8)

    in_channels, out_channels = 32, 32
    n1, n2 = 16, 8            # fine-graph nodes (y), coarse-graph nodes (sup_x)
    e, ea = 40, 24            # fine-graph edges, assignment edges

    sup_x = jax.random.normal(k[0], (n2, in_channels), jnp.float32)
    y = jax.random.normal(k[1], (n1, in_channels), jnp.float32)

    edge_index = jnp.stack([
        jax.random.randint(k[2], (e,), 0, n1),
        jax.random.randint(k[3], (e,), 0, n1)]).astype(jnp.int32)
    edge_weight = jax.random.uniform(k[4], (e,), jnp.float32, 0.1, 1.0)

    assign_index = jnp.stack([
        jax.random.randint(k[5], (ea,), 0, n2),
        jax.random.randint(k[6], (ea,), 0, n1)]).astype(jnp.int32)
    assign_weight = jax.random.uniform(k[7], (ea,), jnp.float32, 0.1, 1.0)

    # Deterministic parameter init (torch Linear weight layout: (out, in)).
    wk1, wk2 = jax.random.split(jax.random.PRNGKey(42))
    bound = 1.0 / np.sqrt(in_channels)
    w_rel = jax.random.uniform(wk1, (out_channels, in_channels), jnp.float32, -bound, bound)
    w_gcn = jax.random.uniform(wk2, (out_channels, in_channels), jnp.float32, -bound, bound)

    x_out, ei_out, ew_out = jax.jit(trans_un_pool)(
        sup_x, y, edge_index, edge_weight, assign_index, assign_weight, w_rel, w_gcn)
    jax.block_until_ready(x_out)

    ref = _reference(sup_x, y, edge_index, edge_weight,
                     assign_index, assign_weight, w_rel, w_gcn)
    # bf16 operands (f32 accumulation) -> compare at bf16-appropriate tolerance.
    np.testing.assert_allclose(np.asarray(x_out), np.asarray(ref), rtol=2e-2, atol=2e-2)
    assert x_out.shape == (n1, out_channels)

    print("KERNEL_OK")
</pallas_src>

<mosaic_0001>
module attributes {stable_mosaic.version = 11 : i64} {
  func.func @_fused_spmm_kernel(%arg0: i32, %arg1: i32, %arg2: memref<16x128xbf16, #tpu.memory_space<vmem>>, %arg3: memref<128x128xbf16, #tpu.memory_space<vmem>>, %arg4: memref<16x128xf32, #tpu.memory_space<vmem>>, %arg5: memref<16x128xf32, #tpu.memory_space<vmem>>) attributes {dimension_semantics = [#tpu.dimension_semantics<parallel>, #tpu.dimension_semantics<arbitrary>], iteration_bounds = array<i64: 1, 1>, scalar_prefetch = 0 : i64, scratch_operands = 1 : i64, tpu.core_type = #tpu.core_type<tc>, window_params = [{transform_indices = @transform_0, window_bounds = array<i64: 16, 128>}, {transform_indices = @transform_1, window_bounds = array<i64: 128, 128>}, {transform_indices = @transform_2, window_bounds = array<i64: 16, 128>}]} {
    %c0_i32 = arith.constant 0 : i32
    %0 = arith.cmpi eq, %arg1, %c0_i32 : i32
    %1 = arith.extui %0 : i1 to i32
    %c0_i32_0 = arith.constant 0 : i32
    %2 = arith.cmpi ne, %1, %c0_i32_0 : i32
    scf.if %2 {
      %cst_10 = arith.constant 0.000000e+00 : f32
      %12 = vector.broadcast %cst_10 : f32 to vector<16x128xf32>
      %c0_11 = arith.constant 0 : index
      %c0_12 = arith.constant 0 : index
      %13 = vector.load %arg5[%c0_11, %c0_12] : memref<16x128xf32, #tpu.memory_space<vmem>>, vector<16x128xf32>
      tpu.vector_store %arg5[%c0_11, %c0_12], %12 {strides = array<i32>} : memref<16x128xf32, #tpu.memory_space<vmem>>, vector<16x128xf32>,
    } else {
    }
    %c0 = arith.constant 0 : index
    %c0_1 = arith.constant 0 : index
    %3 = vector.load %arg5[%c0, %c0_1] : memref<16x128xf32, #tpu.memory_space<vmem>>, vector<16x128xf32>
    %c0_2 = arith.constant 0 : index
    %c0_3 = arith.constant 0 : index
    %4 = vector.load %arg2[%c0_2, %c0_3] : memref<16x128xbf16, #tpu.memory_space<vmem>>, vector<16x128xbf16>
    %c0_4 = arith.constant 0 : index
    %c0_5 = arith.constant 0 : index
    %5 = vector.load %arg3[%c0_4, %c0_5] : memref<128x128xbf16, #tpu.memory_space<vmem>>, vector<128x128xbf16>
    %cst = arith.constant dense<0.000000e+00> : vector<16x128xf32>
    %6 = tpu.matmul %4, %5, %cst {dimension_numbers = #tpu.dot_dimension_numbers<[1], [0], [0], [1], [0, 0, 1, 1], [], []>} : vector<16x128xbf16>, vector<128x128xbf16>, vector<16x128xf32> -> vector<16x128xf32>
    %7 = arith.addf %3, %6 : vector<16x128xf32>
    %c0_6 = arith.constant 0 : index
    %c0_7 = arith.constant 0 : index
    %8 = vector.load %arg5[%c0_6, %c0_7] : memref<16x128xf32, #tpu.memory_space<vmem>>, vector<16x128xf32>
    tpu.vector_store %arg5[%c0_6, %c0_7], %7 {strides = array<i32>} : memref<16x128xf32, #tpu.memory_space<vmem>>, vector<16x128xf32>,
    %c0_i32_8 = arith.constant 0 : i32
    %9 = arith.cmpi eq, %arg1, %c0_i32_8 : i32
    %10 = arith.extui %9 : i1 to i32
    %c0_i32_9 = arith.constant 0 : i32
    %11 = arith.cmpi ne, %10, %c0_i32_9 : i32
    scf.if %11 {
      %c0_10 = arith.constant 0 : index
      %c0_11 = arith.constant 0 : index
      %12 = vector.load %arg5[%c0_10, %c0_11] : memref<16x128xf32, #tpu.memory_space<vmem>>, vector<16x128xf32>
      %c0_12 = arith.constant 0 : index
      %c0_13 = arith.constant 0 : index
      %13 = vector.load %arg4[%c0_12, %c0_13] : memref<16x128xf32, #tpu.memory_space<vmem>>, vector<16x128xf32>
      tpu.vector_store %arg4[%c0_12, %c0_13], %12 {strides = array<i32>} : memref<16x128xf32, #tpu.memory_space<vmem>>, vector<16x128xf32>,
    } else {
    }
    return
  }
  func.func @transform_0(%arg0: i32, %arg1: i32) -> (i32, i32) {
    %c0_i32 = arith.constant 0 : i32
    return %arg0, %arg1 : i32, i32
  }
  func.func @transform_1(%arg0: i32, %arg1: i32) -> (i32, i32) {
    %c0_i32 = arith.constant 0 : i32
    %c0_i32_0 = arith.constant 0 : i32
    return %arg1, %c0_i32 : i32, i32
  }
  func.func @transform_2(%arg0: i32, %arg1: i32) -> (i32, i32) {
    %c0_i32 = arith.constant 0 : i32
    %c0_i32_0 = arith.constant 0 : i32
    return %arg0, %c0_i32 : i32, i32
  }
}

</mosaic_0001>

<bundles_post_ra>
// kernel: trans_un_pool.1
= control target key start
LH: loop header
LB: loop body
LE: loop exit
PB: predicated region body
PF: predicated region fallthrough
CT: control target
= control target key end

     0   :  { %v237_v1 = vmov 0.0   ;;  %vm238_vm0 = vmmov 0   ;;  %s296_s0 = inlined_call_operand.vmem [shape: bf16[16,128], index: 0, kind: input, shape index: {}]   ;;  %s297_s1 = inlined_call_operand.vmem [shape: bf16[128,128], index: 1, kind: input, shape index: {}]   ;;  %s298_s2 = inlined_call_operand.hbm [shape: f32[16,128], index: 2, kind: output, shape index: {}]  }
   0x1   :  { %v204_v0 = vld [vmem:[%s297_s1] sm:$0xff]   ;;  %179 = vmatprep.subr.bf16.mxu0 %v237_v1  ;;  %v205_v2 = vld [vmem:[%s297_s1 + $0x8] sm:$0xff]   ;;  %195 = vmatprep.mubr.msk.bf16.mxu0 %vm238_vm0, %v237_v1  ;;  %v206_v3 = vld [vmem:[%s297_s1 + $0x10] sm:$0xff]  }
   0x2   :  { %180 = vmatpush3.bf16.msra.mxu0 %v204_v0 }
   0x3   :  { %181 = vmatprep.subr.bf16.mxu0 %v237_v1 }
   0x6   :  { %182 = vmatpush3.bf16.msra.mxu0 %v205_v2 }
   0x7   :  { %183 = vmatprep.subr.bf16.mxu0 %v237_v1 }
   0x8   :  { %7 = vsyncpa [#allocation4], 0  ;;  %v207_v4 = vld [vmem:[%s297_s1 + $0x18] sm:$0xff]   ;;  %v208_v5 = vld [vmem:[%s297_s1 + $0x20] sm:$0xff]   ;;  %s239_s27 = smov [#allocation3]  }
   0x9   :  { %v209_v6 = vld [vmem:[%s297_s1 + $0x28] sm:$0xff]   ;;  %v210_v7 = vld [vmem:[%s297_s1 + $0x30] sm:$0xff]   ;;  %v211_v8 = vld [vmem:[%s297_s1 + $0x38] sm:$0xff]   ;;  %s150_s28 = sshll.u32 %s239_s27, 4  ;;  %s151_s28 = int_to_ptr.vmem [resolvable:$true] %s150_s28 }
   0xa   :  { %184 = vmatpush3.bf16.msra.mxu0 %v206_v3  ;;  %v212_v9 = vld [vmem:[%s296_s0] sm:$0xff]   ;;  %s213_s29 = scalar_lea.vmem %s151_s28, 256  ;;  %p218_p1 = scmp.lt.s32.totalorder %s151_s28, %s151_s28 }
   0xb   :  { %185 = vmatprep.subr.bf16.mxu0 %v237_v1  ;;  %p214_p0 = scmp.ne.s32.totalorder %s151_s28, %s213_s29  ;;  %p219_p2 = scmp.lt.s32.totalorder %s213_s29, %s213_s29 }
   0xd   :  { %p220_p3 = por %p219_p2, %p218_p1 }
   0xe   :  { %186 = vmatpush3.bf16.msra.mxu0 %v207_v4 }
   0xf   :  { %187 = vmatprep.subr.bf16.mxu0 %v237_v1  ;;  %p221_p4 = pnand %p220_p3, %p214_p0 }
  0x12   :  { %188 = vmatpush3.bf16.msra.mxu0 %v208_v5 }
  0x13   :  { %189 = vmatprep.subr.bf16.mxu0 %v237_v1 }
  0x16   :  { %190 = vmatpush3.bf16.msra.mxu0 %v209_v6 }
  0x17   :  { %191 = vmatprep.subr.bf16.mxu0 %v237_v1 }
  0x1a   :  { %192 = vmatpush3.bf16.msra.mxu0 %v210_v7 }
  0x1b   :  { %193 = vmatprep.subr.bf16.mxu0 %v237_v1 }
  0x1e   :  { %194 = vmatpush3.bf16.msra.mxu0 %v211_v8 }
  0x21   :  { %196 = vmatmul.mubr.bf16.vlgmr.msra.gmra.mrb[0].mxu0 %v212_v9 }
  0xf4   :  { %v127_v10 = vpop.f32.mrb[0].mxu0 }
  0xf5   :  { %143 = vst [vmem:[#allocation3] sm:$0xff] %v127_v10  ;;  %v197_v11 = vpop.f32.mrb[1].mxu0 }
  0xf6   :  { %v130_v12 = vpop.f32.mrb[2].mxu0 }
  0xf7   :  { %144 = vst [vmem:[#allocation3 + $0x8] sm:$0xff] %v130_v12  ;;  %v198_v13 = vpop.f32.mrb[3].mxu0 }
  0xf8   :  { %224 = shalt.err (!%p221_p4)
}
  0xf9   :  { %s225_s30 = scalar_lea.hbm %s298_s2, 256 }
  0xfa   :  { %p226_p5 = scmp.ne.s32.totalorder %s298_s2, %s225_s30  ;;  %p229_p6 = scmp.lt.u32.totalorder %s225_s30, %s298_s2 }
  0xfc   :  { %p231_p7 = pnand %p229_p6, %p226_p5 }
  0xfe   :  { %234 = shalt.err (!%p231_p7)
}
  0xff   :  { %s240_s7 = smov 128   ;;  %s241_s8 = smov 8  }
 0x100   :  { %156 = dma.vmem_to_hbm [thread:$0]  %s151_s28, 256, %s298_s2, [#allocation4], %s240_s7, %s240_s7, %s241_s8  }
 0x101   :  { %235 = dma.done.wait [#allocation4], 256  }
 0x102   :  { %236 = vsyncadd [#allocation4], 4294967040 }
 0x103   :  { %160 = vsyncpa [#allocation4], 1 }

</bundles_post_ra>
